<compile_context>
chip_gen: v7x
topology: tpu7x:2x2x1
jax: 0.10.0
libtpu: 0.0.40
codegen_flags: <defaults>
</compile_context>

<pallas_src>
import functools

import jax
import jax.numpy as jnp
from jax.experimental import pallas as pl
from jax.experimental.pallas import tpu as pltpu


def _round_up(n, m):
    return (n + m - 1) // m * m


def _mlp_kernel(x_ref, w1_ref, b_ref, w2_ref, out_ref, *, hid_p):
    # fc1 + ReLU: bf16 operands feed the MXU, accumulate in f32, epilogue in f32.
    h = jnp.dot(x_ref[...], w1_ref[...], preferred_element_type=jnp.float32)
    h = jnp.maximum(h + b_ref[:, :hid_p], 0.0)          # b1 slice, broadcasts over batch
    # fc2 + ReLU: recast hidden activations to bf16 for the second MXU pass.
    o = jnp.dot(h.astype(jnp.bfloat16), w2_ref[...], preferred_element_type=jnp.float32)
    o = jnp.maximum(o + b_ref[:, hid_p:], 0.0)          # b2 slice
    out_ref[...] = o.astype(out_ref.dtype)


def class_model_forward(x, w1, b1, w2, b2, *, batch_tile=512):
    """Fused MLP forward (matches PyTorch ClassModel.forward semantics).

    Pads feature dims to 128-lane multiples and the batch to a 16-row multiple,
    runs a 1-D grid over batch tiles, and slices the real (batch, output_dim)
    result out of the lane-dense padded output.
    """
    batch, input_dim = x.shape
    hidden_dim = w1.shape[1]
    output_dim = w2.shape[1]

    # Lane-dense padding of feature dims (zero padding keeps ReLU(0 + 0) = 0 inert).
    in_p = _round_up(input_dim, 128)
    hid_p = _round_up(hidden_dim, 128)
    out_p = _round_up(output_dim, 128)

    # Batch tile: multiple of 16 (bf16 packs 16 rows per sublane tile), capped.
    tb = min(batch_tile, _round_up(batch, 16))
    b_p = _round_up(batch, tb)

    bf16 = jnp.bfloat16
    x_p = jnp.zeros((b_p, in_p), bf16).at[:batch, :input_dim].set(x.astype(bf16))
    w1_p = jnp.zeros((in_p, hid_p), bf16).at[:input_dim, :hidden_dim].set(w1.astype(bf16))
    w2_p = jnp.zeros((hid_p, out_p), bf16).at[:hidden_dim, :output_dim].set(w2.astype(bf16))
    # Pack both biases (f32) into one lane-dense row -> single DMA descriptor.
    b_pk = jnp.zeros((1, hid_p + out_p), jnp.float32)
    b_pk = b_pk.at[0, :hidden_dim].set(b1.reshape(-1).astype(jnp.float32))
    b_pk = b_pk.at[0, hid_p:hid_p + output_dim].set(b2.reshape(-1).astype(jnp.float32))

    grid = (b_p // tb,)
    flops = 2 * b_p * (in_p * hid_p + hid_p * out_p)
    bytes_accessed = (x_p.size + w1_p.size + w2_p.size) * 2 + b_pk.size * 4 + b_p * out_p * 4

    out_padded = pl.pallas_call(
        functools.partial(_mlp_kernel, hid_p=hid_p),
        out_shape=jax.ShapeDtypeStruct((b_p, out_p), jnp.float32),
        grid=grid,
        in_specs=[
            pl.BlockSpec((tb, in_p), lambda i: (i, 0)),           # x: tiled over batch
            pl.BlockSpec((in_p, hid_p), lambda i: (0, 0)),        # w1: VMEM-resident
            pl.BlockSpec((1, hid_p + out_p), lambda i: (0, 0)),   # packed biases: resident
            pl.BlockSpec((hid_p, out_p), lambda i: (0, 0)),       # w2: VMEM-resident
        ],
        out_specs=pl.BlockSpec((tb, out_p), lambda i: (i, 0)),    # lane-dense output
        compiler_params=pltpu.CompilerParams(
            dimension_semantics=("parallel",),                     # v7x: shard batch tiles over 2 TCs
        ),
        cost_estimate=pl.CostEstimate(
            flops=flops, transcendentals=0, bytes_accessed=bytes_accessed),
    )(x_p, w1_p, b_pk, w2_p)

    # Slice the real result out of the padded, lane-dense output.
    return out_padded[:batch, :output_dim]


def init_params(key, input_dim, hidden_dim, output_dim):
    """Deterministic init mimicking nn.Linear's uniform(-1/sqrt(fan_in), 1/sqrt(fan_in))."""
    k1, k2, k3, k4 = jax.random.split(key, 4)
    bound1 = 1.0 / jnp.sqrt(input_dim)
    bound2 = 1.0 / jnp.sqrt(hidden_dim)
    w1 = jax.random.uniform(k1, (input_dim, hidden_dim), jnp.float32, -bound1, bound1)
    b1 = jax.random.uniform(k2, (hidden_dim,), jnp.float32, -bound1, bound1)
    w2 = jax.random.uniform(k3, (hidden_dim, output_dim), jnp.float32, -bound2, bound2)
    b2 = jax.random.uniform(k4, (output_dim,), jnp.float32, -bound2, bound2)
    return w1, b1, w2, b2


if __name__ == "__main__":
    input_dim, hidden_dim, output_dim = 32, 64, 16
    batch = 8

    key = jax.random.PRNGKey(0)
    kx, kp = jax.random.split(key)
    x = jax.random.normal(kx, (batch, input_dim), jnp.float32)
    w1, b1, w2, b2 = init_params(kp, input_dim, hidden_dim, output_dim)

    out = class_model_forward(x, w1, b1, w2, b2)
    out = jax.block_until_ready(out)

    # Reference in plain JAX at highest precision (same semantics as the PyTorch module).
    hi = jax.lax.Precision.HIGHEST
    ref_h = jnp.maximum(jnp.dot(x, w1, precision=hi) + b1, 0.0)
    ref = jnp.maximum(jnp.dot(ref_h, w2, precision=hi) + b2, 0.0)

    assert out.shape == (batch, output_dim)
    # Loose tolerance: kernel feeds the MXU bf16 inputs (f32 accumulation).
    assert jnp.allclose(out, ref, atol=5e-2, rtol=5e-2)

    print("KERNEL_OK")
</pallas_src>

<mosaic_0001>
module attributes {stable_mosaic.version = 11 : i64} {
  func.func @_mlp_kernel(%arg0: i32, %arg1: memref<16x128xbf16, #tpu.memory_space<vmem>>, %arg2: memref<128x128xbf16, #tpu.memory_space<vmem>>, %arg3: memref<1x256xf32, #tpu.memory_space<vmem>>, %arg4: memref<128x128xbf16, #tpu.memory_space<vmem>>, %arg5: memref<16x128xf32, #tpu.memory_space<vmem>>) attributes {dimension_semantics = [#tpu.dimension_semantics<parallel>], iteration_bounds = array<i64: 1>, scalar_prefetch = 0 : i64, scratch_operands = 0 : i64, tpu.core_type = #tpu.core_type<tc>, window_params = [{transform_indices = @transform_0, window_bounds = array<i64: 16, 128>}, {pipeline_mode = #tpu.pipeline_mode<synchronous>, transform_indices = @transform_1, window_bounds = array<i64: 128, 128>}, {pipeline_mode = #tpu.pipeline_mode<synchronous>, transform_indices = @transform_2, window_bounds = array<i64: 1, 256>}, {pipeline_mode = #tpu.pipeline_mode<synchronous>, transform_indices = @transform_3, window_bounds = array<i64: 128, 128>}, {transform_indices = @transform_4, window_bounds = array<i64: 16, 128>}]} {
    %c0 = arith.constant 0 : index
    %c0_0 = arith.constant 0 : index
    %0 = vector.load %arg1[%c0, %c0_0] : memref<16x128xbf16, #tpu.memory_space<vmem>>, vector<16x128xbf16>
    %c0_1 = arith.constant 0 : index
    %c0_2 = arith.constant 0 : index
    %1 = vector.load %arg2[%c0_1, %c0_2] : memref<128x128xbf16, #tpu.memory_space<vmem>>, vector<128x128xbf16>
    %cst = arith.constant dense<0.000000e+00> : vector<16x128xf32>
    %2 = tpu.matmul %0, %1, %cst {dimension_numbers = #tpu.dot_dimension_numbers<[1], [0], [0], [1], [0, 0, 1, 1], [], []>} : vector<16x128xbf16>, vector<128x128xbf16>, vector<16x128xf32> -> vector<16x128xf32>
    %c0_3 = arith.constant 0 : index
    %c0_4 = arith.constant 0 : index
    %3 = vector.load %arg3[%c0_3, %c0_4] : memref<1x256xf32, #tpu.memory_space<vmem>>, vector<1x128xf32>
    %4 = vector.broadcast %3 : vector<1x128xf32> to vector<16x128xf32>
    %5 = arith.addf %2, %4 : vector<16x128xf32>
    %cst_5 = arith.constant 0.000000e+00 : f32
    %6 = vector.broadcast %cst_5 : f32 to vector<16x128xf32>
    %7 = arith.maximumf %5, %6 : vector<16x128xf32>
    %8 = arith.truncf %7 : vector<16x128xf32> to vector<16x128xbf16>
    %c0_6 = arith.constant 0 : index
    %c0_7 = arith.constant 0 : index
    %9 = vector.load %arg4[%c0_6, %c0_7] : memref<128x128xbf16, #tpu.memory_space<vmem>>, vector<128x128xbf16>
    %cst_8 = arith.constant dense<0.000000e+00> : vector<16x128xf32>
    %10 = tpu.matmul %8, %9, %cst_8 {dimension_numbers = #tpu.dot_dimension_numbers<[1], [0], [0], [1], [0, 0, 1, 1], [], []>} : vector<16x128xbf16>, vector<128x128xbf16>, vector<16x128xf32> -> vector<16x128xf32>
    %c0_9 = arith.constant 0 : index
    %c128 = arith.constant 128 : index
    %11 = vector.load %arg3[%c0_9, %c128] : memref<1x256xf32, #tpu.memory_space<vmem>>, vector<1x128xf32>
    %12 = vector.broadcast %11 : vector<1x128xf32> to vector<16x128xf32>
    %13 = arith.addf %10, %12 : vector<16x128xf32>
    %cst_10 = arith.constant 0.000000e+00 : f32
    %14 = vector.broadcast %cst_10 : f32 to vector<16x128xf32>
    %15 = arith.maximumf %13, %14 : vector<16x128xf32>
    %c0_11 = arith.constant 0 : index
    %c0_12 = arith.constant 0 : index
    %16 = vector.load %arg5[%c0_11, %c0_12] : memref<16x128xf32, #tpu.memory_space<vmem>>, vector<16x128xf32>
    tpu.vector_store %arg5[%c0_11, %c0_12], %15 {strides = array<i32>} : memref<16x128xf32, #tpu.memory_space<vmem>>, vector<16x128xf32>,
    return
  }
  func.func @transform_0(%arg0: i32) -> (i32, i32) {
    %c0_i32 = arith.constant 0 : i32
    %c0_i32_0 = arith.constant 0 : i32
    return %arg0, %c0_i32 : i32, i32
  }
  func.func @transform_1(%arg0: i32) -> (i32, i32) {
    %c0_i32 = arith.constant 0 : i32
    %c0_i32_0 = arith.constant 0 : i32
    %c0_i32_1 = arith.constant 0 : i32
    return %c0_i32, %c0_i32_0 : i32, i32
  }
  func.func @transform_2(%arg0: i32) -> (i32, i32) {
    %c0_i32 = arith.constant 0 : i32
    %c0_i32_0 = arith.constant 0 : i32
    %c0_i32_1 = arith.constant 0 : i32
    return %c0_i32, %c0_i32_0 : i32, i32
  }
  func.func @transform_3(%arg0: i32) -> (i32, i32) {
    %c0_i32 = arith.constant 0 : i32
    %c0_i32_0 = arith.constant 0 : i32
    %c0_i32_1 = arith.constant 0 : i32
    return %c0_i32, %c0_i32_0 : i32, i32
  }
  func.func @transform_4(%arg0: i32) -> (i32, i32) {
    %c0_i32 = arith.constant 0 : i32
    %c0_i32_0 = arith.constant 0 : i32
    return %arg0, %c0_i32 : i32, i32
  }
}

</mosaic_0001>

<bundles_post_ra>
// kernel: tpu_custom_call.1
= control target key start
LH: loop header
LB: loop body
LE: loop exit
PB: predicated region body
PF: predicated region fallthrough
CT: control target
= control target key end

     0   :  { %9 = vsyncpa [#allocation3], 0  ;;  %s620_s0 = inlined_call_operand.hbm [shape: bf16[16,128], index: 0, kind: input, shape index: {}]   ;;  %s621_s1 = inlined_call_operand.hbm [shape: bf16[128,128], index: 1, kind: input, shape index: {}]   ;;  %s622_s2 = inlined_call_operand.vmem [shape: f32[1,256], index: 2, kind: input, shape index: {}]   ;;  %s623_s3 = inlined_call_operand.hbm [shape: bf16[128,128], index: 3, kind: input, shape index: {}]   ;;  %s624_s4 = inlined_call_operand.hbm [shape: f32[16,128], index: 4, kind: output, shape index: {}]  }
   0x1   :  { %10 = vsyncpa [#allocation6], 0 }
   0x2   :  { %11 = vsyncpa [#allocation4], 0  ;;  %s515_s15 = smov [#allocation5]   ;;  %s516_s17 = smov [#allocation2]  }
   0x3   :  { %s29_s16 = sshll.u32 %s515_s15, 4  ;;  %s17_s18 = sshll.u32 %s516_s17, 4  ;;  %s30_s16 = int_to_ptr.vmem [resolvable:$true] %s29_s16  ;;  %s550_s18 = int_to_ptr.vmem [resolvable:$true] %s17_s18 }
   0x4   :  { %s421_s21 = scalar_lea.hbm %s621_s1, 1024 }
   0x5   :  { %p422_p0 = scmp.ne.s32.totalorder %s621_s1, %s421_s21  ;;  %p425_p1 = scmp.lt.u32.totalorder %s421_s21, %s621_s1 }
   0x7   :  { %p427_p2 = pnand %p425_p1, %p422_p0 }
   0x9   :  { %430 = shalt.err (!%p427_p2)
}
   0xa   :  { %s431_s26 = scalar_lea.vmem %s30_s16, 1024  ;;  %p436_p4 = scmp.lt.s32.totalorder %s30_s16, %s30_s16 }
   0xb   :  { %p432_p3 = scmp.ne.s32.totalorder %s30_s16, %s431_s26  ;;  %p437_p5 = scmp.lt.s32.totalorder %s431_s26, %s431_s26 }
   0xd   :  { %p438_p6 = por %p437_p5, %p436_p4 }
   0xf   :  { %p439_p7 = pnand %p438_p6, %p432_p3 }
  0x11   :  { %442 = shalt.err (!%p439_p7)
}
  0x12   :  { %s517_s27 = smov 64   ;;  %s518_s28 = smov 4  }
  0x13   :  { %35 = dma.hbm_to_vmem [thread:$0]  %s621_s1, 1024, %s30_s16, [#allocation6], %s517_s27, %s517_s27, %s518_s28  }
  0x14   :  { %s443_s7 = scalar_lea.hbm %s620_s0, 128 }
  0x15   :  { %p444_p8 = scmp.ne.s32.totalorder %s620_s0, %s443_s7  ;;  %p447_p9 = scmp.lt.u32.totalorder %s443_s7, %s620_s0 }
  0x17   :  { %p449_p10 = pnand %p447_p9, %p444_p8 }
  0x19   :  { %452 = shalt.err (!%p449_p10)
}
  0x1a   :  { %s453_s12 = scalar_lea.vmem %s550_s18, 128  ;;  %p458_p12 = scmp.lt.s32.totalorder %s550_s18, %s550_s18 }
  0x1b   :  { %p454_p11 = scmp.ne.s32.totalorder %s550_s18, %s453_s12  ;;  %p459_p13 = scmp.lt.s32.totalorder %s453_s12, %s453_s12 }
  0x1d   :  { %p460_p0 = por %p459_p13, %p458_p12 }
  0x1f   :  { %p461_p1 = pnand %p460_p0, %p454_p11 }
  0x21   :  { %464 = shalt.err (!%p461_p1)
}
  0x22   :  { %23 = dma.hbm_to_vmem [thread:$0]  %s620_s0, 128, %s550_s18, [#allocation3], %s517_s27, %s517_s27, %s518_s28  }
  0x23   :  { %s519_s14 = smov [#allocation7]   ;;  %s465_s19 = scalar_lea.hbm %s623_s3, 1024 }
  0x24   :  { %s43_s15 = sshll.u32 %s519_s14, 4  ;;  %p466_p2 = scmp.ne.s32.totalorder %s623_s3, %s465_s19  ;;  %s44_s15 = int_to_ptr.vmem [resolvable:$true] %s43_s15 }
  0x25   :  { %p469_p3 = scmp.lt.u32.totalorder %s465_s19, %s623_s3 }
  0x27   :  { %p471_p4 = pnand %p469_p3, %p466_p2 }
  0x29   :  { %474 = shalt.err (!%p471_p4)
}
  0x2a   :  { %s475_s24 = scalar_lea.vmem %s44_s15, 1024  ;;  %p480_p6 = scmp.lt.s32.totalorder %s44_s15, %s44_s15 }
  0x2b   :  { %p476_p5 = scmp.ne.s32.totalorder %s44_s15, %s475_s24  ;;  %p481_p7 = scmp.lt.s32.totalorder %s475_s24, %s475_s24 }
  0x2d   :  { %p482_p8 = por %p481_p7, %p480_p6 }
  0x2f   :  { %p483_p9 = pnand %p482_p8, %p476_p5 }
  0x31   :  { %486 = shalt.err (!%p483_p9)
}
  0x32   :  { %49 = dma.hbm_to_vmem [thread:$0]  %s623_s3, 1024, %s44_s15, [#allocation6], %s517_s27, %s517_s27, %s518_s28  }
  0x33   :  { %509 = dma.done.wait [#allocation3], 128  }
  0x34   :  { %510 = vsyncadd [#allocation3], 4294967168 }
  0x35   :  { %511 = dma.done.wait [#allocation6], 2048  }
  0x36   :  { %512 = vsyncadd [#allocation6], 4294965248  ;;  %v520_v0 = vmov 0.0   ;;  %vm521_vm0 = vmmov 0   ;;  %v404_v1 = vld [vmem:[#allocation5] sm:$0xff]   ;;  %v405_v2 = vld [vmem:[#allocation5 + $0x8] sm:$0xff]  }
  0x37   :  { %354 = vmatprep.subr.bf16.mxu0 %v520_v0  ;;  %370 = vmatprep.mubr.msk.bf16.mxu0 %vm521_vm0, %v520_v0  ;;  %v406_v3 = vld [vmem:[#allocation5 + $0x10] sm:$0xff]   ;;  %v413_v4 = vld [vmem:[#allocation7] sm:$0xff]   ;;  %v407_v5 = vld [vmem:[#allocation5 + $0x18] sm:$0xff]   ;;  %s522_s28 = smov [#allocation8]  }
  0x38   :  { %374 = vmatprep.subr.bf16.mxu1 %v520_v0  ;;  %390 = vmatprep.mubr.msk.bf16.mxu1 %vm521_vm0, %v520_v0  ;;  %v414_v6 = vld [vmem:[#allocation7 + $0x8] sm:$0xff]   ;;  %v408_v7 = vld [vmem:[#allocation5 + $0x20] sm:$0xff]   ;;  %v415_v8 = vld [vmem:[#allocation7 + $0x10] sm:$0xff]   ;;  %s304_s29 = sshll.u32 %s522_s28, 4  ;;  %s305_s29 = int_to_ptr.vmem [resolvable:$true] %s304_s29 }
  0x39   :  { %355 = vmatpush3.bf16.msra.mxu0 %v404_v1  ;;  %375 = vmatpush3.bf16.msra.mxu1 %v413_v4  ;;  %v409_v9 = vld [vmem:[#allocation5 + $0x28] sm:$0xff]   ;;  %v416_v10 = vld [vmem:[#allocation7 + $0x18] sm:$0xff]   ;;  %v410_v11 = vld [vmem:[#allocation5 + $0x30] sm:$0xff]   ;;  %s487_s30 = scalar_lea.vmem %s305_s29, 256  ;;  %p492_p11 = scmp.lt.s32.totalorder %s305_s29, %s305_s29 }
  0x3a   :  { %356 = vmatprep.subr.bf16.mxu0 %v520_v0  ;;  %376 = vmatprep.subr.bf16.mxu1 %v520_v0  ;;  %v417_v12 = vld [vmem:[#allocation7 + $0x20] sm:$0xff]   ;;  %v411_v13 = vld [vmem:[#allocation5 + $0x38] sm:$0xff]   ;;  %v418_v14 = vld [vmem:[#allocation7 + $0x28] sm:$0xff]   ;;  %p488_p10 = scmp.ne.s32.totalorder %s305_s29, %s487_s30  ;;  %p493_p12 = scmp.lt.s32.totalorder %s487_s30, %s487_s30 }
  0x3b   :  { %v412_v15 = vld [vmem:[#allocation2] sm:$0xff]   ;;  %v419_v16 = vld [vmem:[#allocation7 + $0x30] sm:$0xff]  }
  0x3c   :  { %v420_v17 = vld [vmem:[#allocation7 + $0x38] sm:$0xff]   ;;  %p494_p13 = por %p493_p12, %p492_p11 }
  0x3d   :  { %357 = vmatpush3.bf16.msra.mxu0 %v405_v2  ;;  %377 = vmatpush3.bf16.msra.mxu1 %v414_v6  ;;  %v317_v18 = vld [vmem:[%s622_s2] ss:$0 sm:$0xff]  ;;  %v327_v28 = vld [vmem:[%s622_s2 + $0x1] ss:$0 sm:$0xff] }
  0x3e   :  { %358 = vmatprep.subr.bf16.mxu0 %v520_v0  ;;  %378 = vmatprep.subr.bf16.mxu1 %v520_v0  ;;  %p495_p0 = pnand %p494_p13, %p488_p10 }
  0x41   :  { %359 = vmatpush3.bf16.msra.mxu0 %v406_v3  ;;  %379 = vmatpush3.bf16.msra.mxu1 %v415_v8 }
  0x42   :  { %360 = vmatprep.subr.bf16.mxu0 %v520_v0  ;;  %380 = vmatprep.subr.bf16.mxu1 %v520_v0 }
  0x45   :  { %361 = vmatpush3.bf16.msra.mxu0 %v407_v5  ;;  %381 = vmatpush3.bf16.msra.mxu1 %v416_v10 }
  0x46   :  { %362 = vmatprep.subr.bf16.mxu0 %v520_v0  ;;  %382 = vmatprep.subr.bf16.mxu1 %v520_v0 }
  0x49   :  { %363 = vmatpush3.bf16.msra.mxu0 %v408_v7  ;;  %383 = vmatpush3.bf16.msra.mxu1 %v417_v12 }
  0x4a   :  { %364 = vmatprep.subr.bf16.mxu0 %v520_v0  ;;  %384 = vmatprep.subr.bf16.mxu1 %v520_v0 }
  0x4d   :  { %365 = vmatpush3.bf16.msra.mxu0 %v409_v9  ;;  %385 = vmatpush3.bf16.msra.mxu1 %v418_v14 }
  0x4e   :  { %366 = vmatprep.subr.bf16.mxu0 %v520_v0  ;;  %386 = vmatprep.subr.bf16.mxu1 %v520_v0 }
  0x51   :  { %367 = vmatpush3.bf16.msra.mxu0 %v410_v11  ;;  %387 = vmatpush3.bf16.msra.mxu1 %v419_v16 }
  0x52   :  { %368 = vmatprep.subr.bf16.mxu0 %v520_v0  ;;  %388 = vmatprep.subr.bf16.mxu1 %v520_v0 }
  0x55   :  { %369 = vmatpush3.bf16.msra.mxu0 %v411_v13  ;;  %389 = vmatpush3.bf16.msra.mxu1 %v420_v17 }
  0x58   :  { %371 = vmatmul.mubr.bf16.vlgmr.msra.gmra.mrb[0].mxu0 %v412_v15 }
 0x12b   :  { %v173_v19 = vpop.f32.mrb[0].mxu0 }
 0x12c   :  { %v174_v20 = vadd.f32 %v317_v18, %v173_v19  ;;  %v372_v21 = vpop.f32.mrb[1].mxu0 }
 0x12d   :  { %v176_v22 = vpop.f32.mrb[2].mxu0 }
 0x12e   :  { %v177_v23 = vadd.f32 %v317_v18, %v176_v22  ;;  %v373_v24 = vpop.f32.mrb[3].mxu0  ;;  %v180_v25 = vmax.f32 %v174_v20, 0.0 }
 0x130   :  { %v181_v26 = vmax.f32 %v177_v23, 0.0 }
 0x132   :  { %v182_v27 = vpack.c.bf16 %v181_v26, %v180_v25 }
 0x134   :  { %391 = vmatmul.mubr.bf16.vlgmr.msra.gmra.mrb[0].mxu1 %v182_v27 }
 0x207   :  { %v288_v29 = vpop.f32.mrb[0].mxu1 }
 0x208   :  { %v289_v30 = vadd.f32 %v327_v28, %v288_v29  ;;  %v392_v31 = vpop.f32.mrb[1].mxu1 }
 0x209   :  { %v291_v32 = vpop.f32.mrb[2].mxu1 }
 0x20a   :  { %v295_v33 = vmax.f32 %v289_v30, 0.0  ;;  %v292_v34 = vadd.f32 %v327_v28, %v291_v32  ;;  %v393_v35 = vpop.f32.mrb[3].mxu1 }
 0x20c   :  { %297 = vst [vmem:[#allocation8] sm:$0xff] %v295_v33  ;;  %v296_v36 = vmax.f32 %v292_v34, 0.0 }
 0x20e   :  { %298 = vst [vmem:[#allocation8 + $0x8] sm:$0xff] %v296_v36 }
 0x20f   :  { %498 = shalt.err (!%p495_p0)
}
 0x210   :  { %s499_s6 = scalar_lea.hbm %s624_s4, 256 }
 0x211   :  { %p500_p1 = scmp.ne.s32.totalorder %s624_s4, %s499_s6  ;;  %p503_p2 = scmp.lt.u32.totalorder %s499_s6, %s624_s4 }
 0x213   :  { %p505_p3 = pnand %p503_p2, %p500_p1 }
 0x215   :  { %508 = shalt.err (!%p505_p3)
}
 0x216   :  { %s523_s11 = smov 128   ;;  %s524_s12 = smov 8  }
 0x217   :  { %310 = dma.vmem_to_hbm [thread:$0]  %s305_s29, 256, %s624_s4, [#allocation4], %s523_s11, %s523_s11, %s524_s12  }
 0x218   :  { %513 = dma.done.wait [#allocation4], 256  }
 0x219   :  { %514 = vsyncadd [#allocation4], 4294967040 }
 0x21a   :  { %314 = vsyncpa [#allocation3], 1 }
 0x21b   :  { %315 = vsyncpa [#allocation6], 1 }
 0x21c   :  { %316 = vsyncpa [#allocation4], 1 }

</bundles_post_ra>
